<compile_context>
chip_gen: v7x
topology: tpu7x:2x2x1
jax: 0.10.0
libtpu: 0.0.40
codegen_flags: <defaults>
</compile_context>

<pallas_src>
import functools

import jax
import jax.numpy as jnp
from jax.experimental import pallas as pl
from jax.experimental.pallas import tpu as pltpu

EPS = 1e-8  # torch F.cosine_similarity default eps


def _round_up(x, m):
    return ((x + m - 1) // m) * m


def _triplet_loss_kernel(a_ref, p_ref, n_ref, out_ref, *,
                         batch, block_rows, pack, feat, margin, need_mask):
    c = pl.program_id(0)          # chunk axis ("parallel": one chunk per TC on v7x)
    i = pl.program_id(1)          # batch-tile axis ("arbitrary": reduction)

    @pl.when(i == 0)
    def _init():
        out_ref[...] = jnp.zeros_like(out_ref)

    # Upcast in-register; HBM traffic stays at the input dtype.
    # TODO(synk): optional bf16 product path (accumulate in f32) for v7x VALU relief.
    a = a_ref[...].astype(jnp.float32)          # (TB, W)  with W = pack * feat
    p = p_ref[...].astype(jnp.float32)
    n = n_ref[...].astype(jnp.float32)

    if pack > 1:
        # Lane-packed rows: recover per-original-row sums with static lane slices
        # (exact f32; the small XLU reductions are off the critical VALU path).
        def rowsum(x):
            cols = [jnp.sum(x[:, j * feat:(j + 1) * feat], axis=1, keepdims=True)
                    for j in range(pack)]
            return jnp.concatenate(cols, axis=1)          # (TB, pack)
    else:
        def rowsum(x):
            return jnp.sum(x, axis=1, keepdims=True)      # (TB, 1)

    ap = rowsum(a * p)
    an = rowsum(a * n)
    a_sq = rowsum(a * a)
    p_sq = rowsum(p * p)
    n_sq = rowsum(n * n)

    # 1 / max(||x||, eps) via EUP rsqrt on the squared norm (eps^2 clamp).
    inv_a = jax.lax.rsqrt(jnp.maximum(a_sq, EPS * EPS))
    inv_p = jax.lax.rsqrt(jnp.maximum(p_sq, EPS * EPS))
    inv_n = jax.lax.rsqrt(jnp.maximum(n_sq, EPS * EPS))

    pos_dist = 1.0 - ap * (inv_a * inv_p)
    neg_dist = 1.0 - an * (inv_a * inv_n)
    per_row = jnp.maximum(pos_dist - neg_dist + margin, 0.0)   # (TB, pack)

    if need_mask:
        # Only emitted when the padded extent != B (ragged tiles / chunk padding).
        block = c * pl.num_programs(1) + i
        sub = jax.lax.broadcasted_iota(jnp.int32, per_row.shape, 0)
        slot = jax.lax.broadcasted_iota(jnp.int32, per_row.shape, 1)
        global_row = block * (block_rows * pack) + sub * pack + slot
        # NOTE: keep the where AFTER the compute so garbage/NaN padded rows are dropped.
        per_row = jnp.where(global_row < batch, per_row, 0.0)

    tile_sum = jnp.sum(jnp.sum(per_row, axis=1, keepdims=True),
                       axis=0, keepdims=True)                  # (1, 1)
    out_ref[...] += tile_sum                                   # grid-resident partial


def triplet_loss(anchor, positive, negative, *, margin=0.2):
    """anchor/positive/negative: (B, D). Returns the scalar triplet loss (f32)."""
    B, D = anchor.shape
    dtype = jnp.dtype(anchor.dtype)
    itemsize = dtype.itemsize
    sublane = {4: 8, 2: 16, 1: 32}.get(itemsize, 8)

    # --- small-D lane packing: view (B, D) as (B/pack, pack*D) so lanes are dense ---
    pack = 1
    if 8 <= D < 128 and 128 % D == 0 and B % (128 // D) == 0:
        pack = 128 // D
    rows, W = B // pack, pack * D
    if pack > 1:
        anchor = anchor.reshape(rows, W)
        positive = positive.reshape(rows, W)
        negative = negative.reshape(rows, W)

    # --- per-generation VMEM budget --------------------------------------------------
    try:
        vmem_cap = int(pltpu.get_tpu_info().vmem_capacity_bytes)
    except Exception:
        vmem_cap = 64 * 1024 * 1024                  # conservative: v7x per-TC VMEM
    vmem_limit = max(32 * 1024 * 1024,
                     min(vmem_cap - 8 * 1024 * 1024, 100 * 1024 * 1024))
    budget = vmem_limit - 8 * 1024 * 1024            # headroom for Mosaic internals

    w_pad = _round_up(W, 128)                        # lane padding counts against VMEM
    # 3 inputs x 2 pipeline buffers (input dtype) + in-kernel f32 working set.
    per_row_bytes = 3 * 2 * w_pad * itemsize + 4 * w_pad * 4
    tb_max = max(sublane, (budget // per_row_bytes) // sublane * sublane)

    # --- leading parallel chunk axis (one chunk per TensorCore on v7x megacore) ------
    num_chunks = 2 if rows >= 2 * sublane else 1
    rows_per_chunk = pl.cdiv(rows, num_chunks)

    if num_chunks == 1 and rows <= tb_max:
        tb = rows                                    # full-extent block (always legal)
    else:
        tb = min(tb_max, _round_up(rows_per_chunk, sublane))
    steps = pl.cdiv(rows_per_chunk, tb)
    need_mask = (num_chunks * steps * tb * pack) != B

    kernel = functools.partial(
        _triplet_loss_kernel, batch=B, block_rows=tb, pack=pack, feat=D,
        margin=float(margin), need_mask=need_mask)

    feat_spec = pl.BlockSpec((tb, W), lambda c, i: (c * steps + i, 0))
    out = pl.pallas_call(
        kernel,
        out_shape=jax.ShapeDtypeStruct((1, 128 * num_chunks), jnp.float32),
        grid_spec=pltpu.PrefetchScalarGridSpec(
            num_scalar_prefetch=0,
            grid=(num_chunks, steps),
            in_specs=[feat_spec, feat_spec, feat_spec],
            out_specs=pl.BlockSpec((1, 128), lambda c, i: (0, c)),
        ),
        compiler_params=pltpu.CompilerParams(
            dimension_semantics=("parallel", "arbitrary"),
            vmem_limit_bytes=int(vmem_limit),
        ),
    )(anchor, positive, negative)

    partials = out[0, ::128]                         # one lane-dense partial per chunk
    return jnp.sum(partials) / B


def triplet_loss_ref(anchor, positive, negative, margin=0.2):
    """Pure-JAX reference mirroring the PyTorch forward (cosine path)."""
    a = anchor.astype(jnp.float32)
    p = positive.astype(jnp.float32)
    n = negative.astype(jnp.float32)

    def cos_sim(x, y):
        dot = jnp.sum(x * y, axis=1)
        nx = jnp.sqrt(jnp.sum(x * x, axis=1))
        ny = jnp.sqrt(jnp.sum(y * y, axis=1))
        return dot / (jnp.maximum(nx, EPS) * jnp.maximum(ny, EPS))

    pos_dist = 1.0 - cos_sim(a, p)
    neg_dist = 1.0 - cos_sim(a, n)
    return jnp.mean(jnp.maximum(pos_dist - neg_dist + margin, 0.0))


# TODO(synk): distance_fn='euclidean' (F.pairwise_distance) path not implemented;
# the module default ('cosine') is what the kernel covers.

if __name__ == "__main__":
    margin = 0.2
    key = jax.random.PRNGKey(0)

    # (B, D, dtype): small shapes exercising the packed / unpacked, ragged and
    # multi-chunk code paths.
    configs = [
        (8, 32, jnp.float32),      # lane-packed (4 rows per packed row), single block
        (37, 48, jnp.float32),     # unpacked, ragged last tile, 2 parallel chunks
        (136, 32, jnp.bfloat16),   # packed + ragged + 2 chunks, bf16 inputs
    ]
    for B, D, dt in configs:
        key, k1, k2, k3 = jax.random.split(key, 4)
        anchor = jax.random.normal(k1, (B, D), dtype=jnp.float32).astype(dt)
        positive = jax.random.normal(k2, (B, D), dtype=jnp.float32).astype(dt)
        negative = jax.random.normal(k3, (B, D), dtype=jnp.float32).astype(dt)

        loss = jax.block_until_ready(
            triplet_loss(anchor, positive, negative, margin=margin))
        ref = triplet_loss_ref(anchor, positive, negative, margin=margin)
        assert jnp.allclose(loss, ref, atol=1e-5, rtol=1e-4), (B, D, dt, loss, ref)

    print("KERNEL_OK")
</pallas_src>

<mosaic_0001>
module attributes {stable_mosaic.version = 11 : i64} {
  func.func @_triplet_loss_kernel(%arg0: i32, %arg1: i32, %arg2: memref<2x128xf32, #tpu.memory_space<vmem>>, %arg3: memref<2x128xf32, #tpu.memory_space<vmem>>, %arg4: memref<2x128xf32, #tpu.memory_space<vmem>>, %arg5: memref<1x128xf32, #tpu.memory_space<vmem>>) attributes {dimension_semantics = [#tpu.dimension_semantics<parallel>, #tpu.dimension_semantics<arbitrary>], iteration_bounds = array<i64: 1, 1>, scalar_prefetch = 0 : i64, scratch_operands = 0 : i64, tpu.core_type = #tpu.core_type<tc>, window_params = [{transform_indices = @transform_0, window_bounds = array<i64: 2, 128>}, {transform_indices = @transform_1, window_bounds = array<i64: 2, 128>}, {transform_indices = @transform_2, window_bounds = array<i64: 2, 128>}, {transform_indices = @transform_3, window_bounds = array<i64: 1, 128>}]} {
    %c0_i32 = arith.constant 0 : i32
    %0 = arith.cmpi eq, %arg1, %c0_i32 : i32
    %1 = arith.extui %0 : i1 to i32
    %c0_i32_0 = arith.constant 0 : i32
    %2 = arith.cmpi ne, %1, %c0_i32_0 : i32
    scf.if %2 {
      %cst_38 = arith.constant 0.000000e+00 : f32
      %106 = vector.broadcast %cst_38 : f32 to vector<1x128xf32>
      %c0_39 = arith.constant 0 : index
      %c0_40 = arith.constant 0 : index
      %107 = vector.load %arg5[%c0_39, %c0_40] : memref<1x128xf32, #tpu.memory_space<vmem>>, vector<1x128xf32>
      tpu.vector_store %arg5[%c0_39, %c0_40], %106 {strides = array<i32>} : memref<1x128xf32, #tpu.memory_space<vmem>>, vector<1x128xf32>,
    } else {
    }
    %c0 = arith.constant 0 : index
    %c0_1 = arith.constant 0 : index
    %3 = vector.load %arg2[%c0, %c0_1] : memref<2x128xf32, #tpu.memory_space<vmem>>, vector<2x128xf32>
    %c0_2 = arith.constant 0 : index
    %c0_3 = arith.constant 0 : index
    %4 = vector.load %arg3[%c0_2, %c0_3] : memref<2x128xf32, #tpu.memory_space<vmem>>, vector<2x128xf32>
    %c0_4 = arith.constant 0 : index
    %c0_5 = arith.constant 0 : index
    %5 = vector.load %arg4[%c0_4, %c0_5] : memref<2x128xf32, #tpu.memory_space<vmem>>, vector<2x128xf32>
    %6 = arith.mulf %3, %4 : vector<2x128xf32>
    %7 = vector.extract_strided_slice %6 {offsets = [0, 0], sizes = [2, 32], strides = [1, 1]} : vector<2x128xf32> to vector<2x32xf32>
    %cst = arith.constant dense<0.000000e+00> : vector<2xf32>
    %8 = vector.multi_reduction <add>, %7, %cst [1] : vector<2x32xf32> to vector<2xf32>
    %9 = vector.shape_cast %8 : vector<2xf32> to vector<2x1xf32>
    %10 = vector.extract_strided_slice %6 {offsets = [0, 32], sizes = [2, 32], strides = [1, 1]} : vector<2x128xf32> to vector<2x32xf32>
    %cst_6 = arith.constant dense<0.000000e+00> : vector<2xf32>
    %11 = vector.multi_reduction <add>, %10, %cst_6 [1] : vector<2x32xf32> to vector<2xf32>
    %12 = vector.shape_cast %11 : vector<2xf32> to vector<2x1xf32>
    %13 = vector.extract_strided_slice %6 {offsets = [0, 64], sizes = [2, 32], strides = [1, 1]} : vector<2x128xf32> to vector<2x32xf32>
    %cst_7 = arith.constant dense<0.000000e+00> : vector<2xf32>
    %14 = vector.multi_reduction <add>, %13, %cst_7 [1] : vector<2x32xf32> to vector<2xf32>
    %15 = vector.shape_cast %14 : vector<2xf32> to vector<2x1xf32>
    %16 = vector.extract_strided_slice %6 {offsets = [0, 96], sizes = [2, 32], strides = [1, 1]} : vector<2x128xf32> to vector<2x32xf32>
    %cst_8 = arith.constant dense<0.000000e+00> : vector<2xf32>
    %17 = vector.multi_reduction <add>, %16, %cst_8 [1] : vector<2x32xf32> to vector<2xf32>
    %18 = vector.shape_cast %17 : vector<2xf32> to vector<2x1xf32>
    %19 = tpu.concatenate %9, %12, %15, %18 in 1 : vector<2x1xf32>, vector<2x1xf32>, vector<2x1xf32>, vector<2x1xf32> -> vector<2x4xf32>
    %20 = arith.mulf %3, %5 : vector<2x128xf32>
    %21 = vector.extract_strided_slice %20 {offsets = [0, 0], sizes = [2, 32], strides = [1, 1]} : vector<2x128xf32> to vector<2x32xf32>
    %cst_9 = arith.constant dense<0.000000e+00> : vector<2xf32>
    %22 = vector.multi_reduction <add>, %21, %cst_9 [1] : vector<2x32xf32> to vector<2xf32>
    %23 = vector.shape_cast %22 : vector<2xf32> to vector<2x1xf32>
    %24 = vector.extract_strided_slice %20 {offsets = [0, 32], sizes = [2, 32], strides = [1, 1]} : vector<2x128xf32> to vector<2x32xf32>
    %cst_10 = arith.constant dense<0.000000e+00> : vector<2xf32>
    %25 = vector.multi_reduction <add>, %24, %cst_10 [1] : vector<2x32xf32> to vector<2xf32>
    %26 = vector.shape_cast %25 : vector<2xf32> to vector<2x1xf32>
    %27 = vector.extract_strided_slice %20 {offsets = [0, 64], sizes = [2, 32], strides = [1, 1]} : vector<2x128xf32> to vector<2x32xf32>
    %cst_11 = arith.constant dense<0.000000e+00> : vector<2xf32>
    %28 = vector.multi_reduction <add>, %27, %cst_11 [1] : vector<2x32xf32> to vector<2xf32>
    %29 = vector.shape_cast %28 : vector<2xf32> to vector<2x1xf32>
    %30 = vector.extract_strided_slice %20 {offsets = [0, 96], sizes = [2, 32], strides = [1, 1]} : vector<2x128xf32> to vector<2x32xf32>
    %cst_12 = arith.constant dense<0.000000e+00> : vector<2xf32>
    %31 = vector.multi_reduction <add>, %30, %cst_12 [1] : vector<2x32xf32> to vector<2xf32>
    %32 = vector.shape_cast %31 : vector<2xf32> to vector<2x1xf32>
    %33 = tpu.concatenate %23, %26, %29, %32 in 1 : vector<2x1xf32>, vector<2x1xf32>, vector<2x1xf32>, vector<2x1xf32> -> vector<2x4xf32>
    %34 = arith.mulf %3, %3 : vector<2x128xf32>
    %35 = vector.extract_strided_slice %34 {offsets = [0, 0], sizes = [2, 32], strides = [1, 1]} : vector<2x128xf32> to vector<2x32xf32>
    %cst_13 = arith.constant dense<0.000000e+00> : vector<2xf32>
    %36 = vector.multi_reduction <add>, %35, %cst_13 [1] : vector<2x32xf32> to vector<2xf32>
    %37 = vector.shape_cast %36 : vector<2xf32> to vector<2x1xf32>
    %38 = vector.extract_strided_slice %34 {offsets = [0, 32], sizes = [2, 32], strides = [1, 1]} : vector<2x128xf32> to vector<2x32xf32>
    %cst_14 = arith.constant dense<0.000000e+00> : vector<2xf32>
    %39 = vector.multi_reduction <add>, %38, %cst_14 [1] : vector<2x32xf32> to vector<2xf32>
    %40 = vector.shape_cast %39 : vector<2xf32> to vector<2x1xf32>
    %41 = vector.extract_strided_slice %34 {offsets = [0, 64], sizes = [2, 32], strides = [1, 1]} : vector<2x128xf32> to vector<2x32xf32>
    %cst_15 = arith.constant dense<0.000000e+00> : vector<2xf32>
    %42 = vector.multi_reduction <add>, %41, %cst_15 [1] : vector<2x32xf32> to vector<2xf32>
    %43 = vector.shape_cast %42 : vector<2xf32> to vector<2x1xf32>
    %44 = vector.extract_strided_slice %34 {offsets = [0, 96], sizes = [2, 32], strides = [1, 1]} : vector<2x128xf32> to vector<2x32xf32>
    %cst_16 = arith.constant dense<0.000000e+00> : vector<2xf32>
    %45 = vector.multi_reduction <add>, %44, %cst_16 [1] : vector<2x32xf32> to vector<2xf32>
    %46 = vector.shape_cast %45 : vector<2xf32> to vector<2x1xf32>
    %47 = tpu.concatenate %37, %40, %43, %46 in 1 : vector<2x1xf32>, vector<2x1xf32>, vector<2x1xf32>, vector<2x1xf32> -> vector<2x4xf32>
    %48 = arith.mulf %4, %4 : vector<2x128xf32>
    %49 = vector.extract_strided_slice %48 {offsets = [0, 0], sizes = [2, 32], strides = [1, 1]} : vector<2x128xf32> to vector<2x32xf32>
    %cst_17 = arith.constant dense<0.000000e+00> : vector<2xf32>
    %50 = vector.multi_reduction <add>, %49, %cst_17 [1] : vector<2x32xf32> to vector<2xf32>
    %51 = vector.shape_cast %50 : vector<2xf32> to vector<2x1xf32>
    %52 = vector.extract_strided_slice %48 {offsets = [0, 32], sizes = [2, 32], strides = [1, 1]} : vector<2x128xf32> to vector<2x32xf32>
    %cst_18 = arith.constant dense<0.000000e+00> : vector<2xf32>
    %53 = vector.multi_reduction <add>, %52, %cst_18 [1] : vector<2x32xf32> to vector<2xf32>
    %54 = vector.shape_cast %53 : vector<2xf32> to vector<2x1xf32>
    %55 = vector.extract_strided_slice %48 {offsets = [0, 64], sizes = [2, 32], strides = [1, 1]} : vector<2x128xf32> to vector<2x32xf32>
    %cst_19 = arith.constant dense<0.000000e+00> : vector<2xf32>
    %56 = vector.multi_reduction <add>, %55, %cst_19 [1] : vector<2x32xf32> to vector<2xf32>
    %57 = vector.shape_cast %56 : vector<2xf32> to vector<2x1xf32>
    %58 = vector.extract_strided_slice %48 {offsets = [0, 96], sizes = [2, 32], strides = [1, 1]} : vector<2x128xf32> to vector<2x32xf32>
    %cst_20 = arith.constant dense<0.000000e+00> : vector<2xf32>
    %59 = vector.multi_reduction <add>, %58, %cst_20 [1] : vector<2x32xf32> to vector<2xf32>
    %60 = vector.shape_cast %59 : vector<2xf32> to vector<2x1xf32>
    %61 = tpu.concatenate %51, %54, %57, %60 in 1 : vector<2x1xf32>, vector<2x1xf32>, vector<2x1xf32>, vector<2x1xf32> -> vector<2x4xf32>
    %62 = arith.mulf %5, %5 : vector<2x128xf32>
    %63 = vector.extract_strided_slice %62 {offsets = [0, 0], sizes = [2, 32], strides = [1, 1]} : vector<2x128xf32> to vector<2x32xf32>
    %cst_21 = arith.constant dense<0.000000e+00> : vector<2xf32>
    %64 = vector.multi_reduction <add>, %63, %cst_21 [1] : vector<2x32xf32> to vector<2xf32>
    %65 = vector.shape_cast %64 : vector<2xf32> to vector<2x1xf32>
    %66 = vector.extract_strided_slice %62 {offsets = [0, 32], sizes = [2, 32], strides = [1, 1]} : vector<2x128xf32> to vector<2x32xf32>
    %cst_22 = arith.constant dense<0.000000e+00> : vector<2xf32>
    %67 = vector.multi_reduction <add>, %66, %cst_22 [1] : vector<2x32xf32> to vector<2xf32>
    %68 = vector.shape_cast %67 : vector<2xf32> to vector<2x1xf32>
    %69 = vector.extract_strided_slice %62 {offsets = [0, 64], sizes = [2, 32], strides = [1, 1]} : vector<2x128xf32> to vector<2x32xf32>
    %cst_23 = arith.constant dense<0.000000e+00> : vector<2xf32>
    %70 = vector.multi_reduction <add>, %69, %cst_23 [1] : vector<2x32xf32> to vector<2xf32>
    %71 = vector.shape_cast %70 : vector<2xf32> to vector<2x1xf32>
    %72 = vector.extract_strided_slice %62 {offsets = [0, 96], sizes = [2, 32], strides = [1, 1]} : vector<2x128xf32> to vector<2x32xf32>
    %cst_24 = arith.constant dense<0.000000e+00> : vector<2xf32>
    %73 = vector.multi_reduction <add>, %72, %cst_24 [1] : vector<2x32xf32> to vector<2xf32>
    %74 = vector.shape_cast %73 : vector<2xf32> to vector<2x1xf32>
    %75 = tpu.concatenate %65, %68, %71, %74 in 1 : vector<2x1xf32>, vector<2x1xf32>, vector<2x1xf32>, vector<2x1xf32> -> vector<2x4xf32>
    %cst_25 = arith.constant 1.000000e-16 : f32
    %76 = vector.broadcast %cst_25 : f32 to vector<2x4xf32>
    %77 = arith.maximumf %47, %76 : vector<2x4xf32>
    %78 = math.rsqrt %77 : vector<2x4xf32>
    %cst_26 = arith.constant 1.000000e-16 : f32
    %79 = vector.broadcast %cst_26 : f32 to vector<2x4xf32>
    %80 = arith.maximumf %61, %79 : vector<2x4xf32>
    %81 = math.rsqrt %80 : vector<2x4xf32>
    %cst_27 = arith.constant 1.000000e-16 : f32
    %82 = vector.broadcast %cst_27 : f32 to vector<2x4xf32>
    %83 = arith.maximumf %75, %82 : vector<2x4xf32>
    %84 = math.rsqrt %83 : vector<2x4xf32>
    %85 = arith.mulf %78, %81 : vector<2x4xf32>
    %86 = arith.mulf %19, %85 : vector<2x4xf32>
    %cst_28 = arith.constant 1.000000e+00 : f32
    %87 = vector.broadcast %cst_28 : f32 to vector<2x4xf32>
    %88 = arith.subf %87, %86 : vector<2x4xf32>
    %89 = arith.mulf %78, %84 : vector<2x4xf32>
    %90 = arith.mulf %33, %89 : vector<2x4xf32>
    %cst_29 = arith.constant 1.000000e+00 : f32
    %91 = vector.broadcast %cst_29 : f32 to vector<2x4xf32>
    %92 = arith.subf %91, %90 : vector<2x4xf32>
    %93 = arith.subf %88, %92 : vector<2x4xf32>
    %cst_30 = arith.constant 2.000000e-01 : f32
    %94 = vector.broadcast %cst_30 : f32 to vector<2x4xf32>
    %95 = arith.addf %93, %94 : vector<2x4xf32>
    %cst_31 = arith.constant 0.000000e+00 : f32
    %96 = vector.broadcast %cst_31 : f32 to vector<2x4xf32>
    %97 = arith.maximumf %95, %96 : vector<2x4xf32>
    %cst_32 = arith.constant dense<0.000000e+00> : vector<2xf32>
    %98 = vector.multi_reduction <add>, %97, %cst_32 [1] : vector<2x4xf32> to vector<2xf32>
    %99 = vector.shape_cast %98 : vector<2xf32> to vector<2x1xf32>
    %cst_33 = arith.constant dense<0.000000e+00> : vector<1xf32>
    %100 = vector.multi_reduction <add>, %99, %cst_33 [0] : vector<2x1xf32> to vector<1xf32>
    %101 = vector.shape_cast %100 : vector<1xf32> to vector<1x1xf32>
    %c0_34 = arith.constant 0 : index
    %c0_35 = arith.constant 0 : index
    %102 = vector.load %arg5[%c0_34, %c0_35] : memref<1x128xf32, #tpu.memory_space<vmem>>, vector<1x128xf32>
    %103 = vector.broadcast %101 : vector<1x1xf32> to vector<1x128xf32>
    %104 = arith.addf %102, %103 : vector<1x128xf32>
    %c0_36 = arith.constant 0 : index
    %c0_37 = arith.constant 0 : index
    %105 = vector.load %arg5[%c0_36, %c0_37] : memref<1x128xf32, #tpu.memory_space<vmem>>, vector<1x128xf32>
    tpu.vector_store %arg5[%c0_36, %c0_37], %104 {strides = array<i32>} : memref<1x128xf32, #tpu.memory_space<vmem>>, vector<1x128xf32>,
    return
  }
  func.func @transform_0(%arg0: i32, %arg1: i32) -> (i32, i32) {
    %c1_i32 = arith.constant 1 : i32
    %0 = arith.muli %arg0, %c1_i32 : i32
    %1 = arith.addi %0, %arg1 : i32
    %c0_i32 = arith.constant 0 : i32
    %c0_i32_0 = arith.constant 0 : i32
    return %1, %c0_i32 : i32, i32
  }
  func.func @transform_1(%arg0: i32, %arg1: i32) -> (i32, i32) {
    %c1_i32 = arith.constant 1 : i32
    %0 = arith.muli %arg0, %c1_i32 : i32
    %1 = arith.addi %0, %arg1 : i32
    %c0_i32 = arith.constant 0 : i32
    %c0_i32_0 = arith.constant 0 : i32
    return %1, %c0_i32 : i32, i32
  }
  func.func @transform_2(%arg0: i32, %arg1: i32) -> (i32, i32) {
    %c1_i32 = arith.constant 1 : i32
    %0 = arith.muli %arg0, %c1_i32 : i32
    %1 = arith.addi %0, %arg1 : i32
    %c0_i32 = arith.constant 0 : i32
    %c0_i32_0 = arith.constant 0 : i32
    return %1, %c0_i32 : i32, i32
  }
  func.func @transform_3(%arg0: i32, %arg1: i32) -> (i32, i32) {
    %c0_i32 = arith.constant 0 : i32
    %c0_i32_0 = arith.constant 0 : i32
    return %c0_i32, %arg0 : i32, i32
  }
}

</mosaic_0001>

<bundles_post_ra>
// kernel: tpu_custom_call.1
= control target key start
LH: loop header
LB: loop body
LE: loop exit
PB: predicated region body
PF: predicated region fallthrough
CT: control target
= control target key end

     0   :  { %8 = vsyncpa [#allocation3], 0  ;;  %s436_s0 = inlined_call_operand.hbm [shape: f32[2,128], index: 0, kind: input, shape index: {}]   ;;  %s437_s1 = inlined_call_operand.vmem [shape: f32[2,128], index: 1, kind: input, shape index: {}]   ;;  %s438_s2 = inlined_call_operand.vmem [shape: f32[2,128], index: 2, kind: input, shape index: {}]   ;;  %s439_s3 = inlined_call_operand.hbm [shape: f32[1,128], index: 3, kind: output, shape index: {}]  }
   0x1   :  { %9 = vsyncpa [#allocation4], 0  ;;  %s324_s12 = smov [#allocation2]   ;;  %s276_s16 = scalar_lea.hbm %s436_s0, 32 }
   0x2   :  { %s19_s13 = sshll.u32 %s324_s12, 4  ;;  %p277_p0 = scmp.ne.s32.totalorder %s436_s0, %s276_s16  ;;  %s20_s13 = int_to_ptr.vmem [resolvable:$true] %s19_s13 }
   0x3   :  { %p280_p1 = scmp.lt.u32.totalorder %s276_s16, %s436_s0 }
   0x5   :  { %p282_p2 = pnand %p280_p1, %p277_p0 }
   0x7   :  { %285 = shalt.err (!%p282_p2)
}
   0x8   :  { %s286_s21 = scalar_lea.vmem %s20_s13, 32  ;;  %p291_p4 = scmp.lt.s32.totalorder %s20_s13, %s20_s13 }
   0x9   :  { %p287_p3 = scmp.ne.s32.totalorder %s20_s13, %s286_s21  ;;  %p292_p5 = scmp.lt.s32.totalorder %s286_s21, %s286_s21 }
   0xb   :  { %p293_p6 = por %p292_p5, %p291_p4 }
   0xd   :  { %p294_p7 = pnand %p293_p6, %p287_p3 }
   0xf   :  { %297 = shalt.err (!%p294_p7)
}
  0x10   :  { %22 = dma.hbm_to_vmem [thread:$0]  %s436_s0, 32, %s20_s13, [#allocation3]  }
  0x11   :  { %320 = dma.done.wait [#allocation3], 32  }
  0x12   :  { %321 = vsyncadd [#allocation3], 4294967264  ;;  %v70_v0 = vld [vmem:[#allocation2] sm:$0x3]  ;;  %vm74_vm0 = vcmask 254976   ;;  %s325_s26 = smov 64  }
  0x13   :  { %v71_v1 = vld [vmem:[%s437_s1] sm:$0x3]  ;;  %s326_s27 = smov 96   ;;  %s327_s29 = smov 32   ;;  %v129_v7 = vmul.f32 %v70_v0, %v70_v0  ;;  %vm97_vm1 = vcmask 7168   ;;  %vm99_vm2 = vcmask 15360  }
  0x14   :  { %v73_v2 = vmul.f32 %v71_v1, %v70_v0  ;;  %v72_v4 = vld [vmem:[%s438_s2] sm:$0x3]  ;;  %v155_v21 = vmul.f32 %v71_v1, %v71_v1  ;;  %vm101_vm3 = vcmask 23552   ;;  %vm222_vm4 = vcmask 25600   ;;  %s329_s1 = smov [#allocation5]  }
  0x15   :  { %v103_v5 = vmul.f32 %v72_v4, %v70_v0  ;;  %v130_v8 = vsel %vm74_vm0, %v129_v7, 0.0  ;;  %v181_v24 = vmul.f32 %v72_v4, %v72_v4  ;;  %vm226_vm5 = vcmask 1041408   ;;  %s243_s2 = sshll.u32 %s329_s1, 4  ;;  %s244_s2 = int_to_ptr.vmem [resolvable:$true] %s243_s2 }
  0x16   :  { %85 = vrot.lane.b32.xlu1 %v73_v2, %s325_s26  ;;  %v75_v3 = vsel %vm74_vm0, %v73_v2, 0.0  ;;  %v156_v50 = vsel %vm74_vm0, %v155_v21, 0.0  ;;  %s298_s30 = scalar_lea.vmem %s244_s2, 16  ;;  %s302_s4 = scalar_lea.vmem %s244_s2, 32 }
  0x17   :  { %76 = vadd.xlane.f32.xlu0 %v75_v3  ;;  %v104_v6 = vsel %vm74_vm0, %v103_v5, 0.0  ;;  %v182_v46 = vsel %vm74_vm0, %v181_v24, 0.0  ;;  %p299_p8 = scmp.ne.s32.totalorder %s244_s2, %s298_s30  ;;  %p303_p9 = scmp.lt.s32.totalorder %s244_s2, %s244_s2 }
  0x18   :  { %p304_p10 = scmp.lt.s32.totalorder %s302_s4, %s298_s30 }
  0x1a   :  { %p305_p11 = por %p304_p10, %p303_p9 }
  0x1c   :  { %p306_p12 = pnand %p305_p11, %p299_p8 }
  0x2d   :  { %79 = vrot.lane.b32.xlu0 %v73_v2, %s326_s27 }
  0x31   :  { %91 = vrot.lane.b32.xlu0 %v73_v2, %s327_s29 }
  0x35   :  { %108 = vrot.lane.b32.xlu0 %v103_v5, %s326_s27 }
  0x39   :  { %120 = vrot.lane.b32.xlu0 %v103_v5, %s327_s29 }
  0x3a   :  { %105 = vadd.xlane.f32.xlu1 %v104_v6 }
  0x4b   :  { %114 = vrot.lane.b32.xlu1 %v103_v5, %s325_s26 }
  0x58   :  { %131 = vadd.xlane.f32.xlu0 %v130_v8 }
  0x88   :  { %v86_v12 = vpop.permute.xlu1 %85 }
  0x89   :  { %v88_v14 = vsel %vm74_vm0, %v86_v12, 0.0 }
  0xa4   :  { %v77_v9 = vpop.xlane.xlu0 %76 }
  0xa8   :  { %v80_v10 = vpop.permute.xlu0 %79 }
  0xa9   :  { %v82_v11 = vsel %vm74_vm0, %v80_v10, 0.0 }
  0xaa   :  { %83 = vadd.xlane.f32.xlu1 %v82_v11 }
  0xac   :  { %v92_v13 = vpop.permute.xlu0 %91 }
  0xad   :  { %v94_v15 = vsel %vm74_vm0, %v92_v13, 0.0 }
  0xae   :  { %89 = vadd.xlane.f32.xlu1 %v88_v14  ;;  %95 = vadd.xlane.f32.xlu0 %v94_v15 }
  0xb0   :  { %v109_v16 = vpop.permute.xlu0 %108 }
  0xb1   :  { %v111_v17 = vsel %vm74_vm0, %v109_v16, 0.0 }
  0xb2   :  { %112 = vadd.xlane.f32.xlu1 %v111_v17 }
  0xb4   :  { %v121_v18 = vpop.permute.xlu0 %120 }
  0xb5   :  { %v123_v19 = vsel %vm74_vm0, %v121_v18, 0.0 }
  0xb6   :  { %124 = vadd.xlane.f32.xlu0 %v123_v19 }
  0xc7   :  { %v106_v20 = vpop.xlane.xlu1 %105 }
  0xcb   :  { %v115_v22 = vpop.permute.xlu1 %114 }
  0xcc   :  { %v117_v23 = vsel %vm74_vm0, %v115_v22, 0.0  ;;  %160 = vrot.lane.b32.xlu0 %v155_v21, %s326_s27 }
  0xcd   :  { %118 = vadd.xlane.f32.xlu1 %v117_v23 }
  0xd0   :  { %192 = vrot.lane.b32.xlu0 %v181_v24, %s325_s26 }
  0xd4   :  { %172 = vrot.lane.b32.xlu0 %v155_v21, %s327_s29 }
  0xde   :  { %134 = vrot.lane.b32.xlu1 %v129_v7, %s326_s27 }
  0xe2   :  { %186 = vrot.lane.b32.xlu1 %v181_v24, %s326_s27 }
  0xe5   :  { %v132_v25 = vpop.xlane.xlu0 %131 }
  0xe6   :  { %140 = vrot.lane.b32.xlu1 %v129_v7, %s325_s26 }
  0xea   :  { %166 = vrot.lane.b32.xlu1 %v155_v21, %s325_s26 }
  0xee   :  { %146 = vrot.lane.b32.xlu1 %v129_v7, %s327_s29 }
  0xf2   :  { %198 = vrot.lane.b32.xlu1 %v181_v24, %s327_s29 }
 0x137   :  { %v84_v26 = vpop.xlane.xlu1 %83 }
 0x138   :  { %v98_v27 = vsel %vm97_vm1, %v77_v9, %v84_v26 }
 0x13b   :  { %v90_v28 = vpop.xlane.xlu1 %89  ;;  %v96_v29 = vpop.xlane.xlu0 %95 }
 0x13c   :  { %v100_v30 = vsel %vm99_vm2, %v98_v27, %v90_v28 }
 0x13d   :  { %v395_v31 = vsel %vm101_vm3, %v100_v30, %v96_v29  ;;  %v328_v30 = vmov 0.0  }
 0x13e   :  { %69 = vst [vmem:[#allocation5] sm:$0x1] %v328_v30 }
 0x13f   :  { %v113_v32 = vpop.xlane.xlu1 %112 }
 0x140   :  { %v126_v34 = vsel %vm97_vm1, %v106_v20, %v113_v32 }
 0x143   :  { %v125_v33 = vpop.xlane.xlu0 %124 }
 0x147   :  { %v161_v43 = vpop.permute.xlu0 %160 }
 0x148   :  { %v163_v53 = vsel %vm74_vm0, %v161_v43, 0.0 }
 0x14b   :  { %v193_v48 = vpop.permute.xlu0 %192 }
 0x14c   :  { %v195_v51 = vsel %vm74_vm0, %v193_v48, 0.0 }
 0x14f   :  { %v173_v52 = vpop.permute.xlu0 %172 }
 0x150   :  { %v175_v54 = vsel %vm74_vm0, %v173_v52, 0.0 }
 0x15a   :  { %v119_v35 = vpop.xlane.xlu1 %118 }
 0x15b   :  { %v127_v36 = vsel %vm99_vm2, %v126_v34, %v119_v35 }
 0x15c   :  { %v400_v37 = vsel %vm101_vm3, %v127_v36, %v125_v33 }
 0x15e   :  { %v135_v38 = vpop.permute.xlu1 %134 }
 0x15f   :  { %v137_v39 = vsel %vm74_vm0, %v135_v38, 0.0 }
 0x160   :  { %138 = vadd.xlane.f32.xlu0 %v137_v39  ;;  %v234_v39 = vld [vmem:[#allocation5] sm:$0x1] }
 0x162   :  { %v187_v40 = vpop.permute.xlu1 %186 }
 0x163   :  { %v189_v56 = vsel %vm74_vm0, %v187_v40, 0.0 }
 0x166   :  { %v141_v41 = vpop.permute.xlu1 %140 }
 0x167   :  { %v143_v42 = vsel %vm74_vm0, %v141_v41, 0.0 }
 0x168   :  { %144 = vadd.xlane.f32.xlu1 %v143_v42 }
 0x16a   :  { %v167_v44 = vpop.permute.xlu1 %166 }
 0x16b   :  { %v169_v45 = vsel %vm74_vm0, %v167_v44, 0.0 }
 0x16c   :  { %170 = vadd.xlane.f32.xlu1 %v169_v45 }
 0x16e   :  { %v147_v47 = vpop.permute.xlu1 %146 }
 0x16f   :  { %v149_v49 = vsel %vm74_vm0, %v147_v47, 0.0 }
 0x170   :  { %150 = vadd.xlane.f32.xlu0 %v149_v49  ;;  %183 = vadd.xlane.f32.xlu1 %v182_v46 }
 0x172   :  { %v199_v55 = vpop.permute.xlu1 %198 }
 0x173   :  { %v201_v57 = vsel %vm74_vm0, %v199_v55, 0.0 }
 0x174   :  { %157 = vadd.xlane.f32.xlu0 %v156_v50  ;;  %196 = vadd.xlane.f32.xlu1 %v195_v51 }
 0x178   :  { %164 = vadd.xlane.f32.xlu0 %v163_v53 }
 0x17c   :  { %176 = vadd.xlane.f32.xlu0 %v175_v54 }
 0x180   :  { %190 = vadd.xlane.f32.xlu0 %v189_v56 }
 0x184   :  { %202 = vadd.xlane.f32.xlu0 %v201_v57 }
 0x1ed   :  { %v139_v58 = vpop.xlane.xlu0 %138 }
 0x1ee   :  { %v152_v1 = vsel %vm97_vm1, %v132_v25, %v139_v58 }
 0x1f5   :  { %v145_v60 = vpop.xlane.xlu1 %144 }
 0x1f6   :  { %v153_v2 = vsel %vm99_vm2, %v152_v1, %v145_v60 }
 0x1f9   :  { %v171_v63 = vpop.xlane.xlu1 %170 }
 0x1fd   :  { %v151_v59 = vpop.xlane.xlu0 %150  ;;  %v184_v6 = vpop.xlane.xlu1 %183 }
 0x1fe   :  { %v154_v5 = vsel %vm101_vm3, %v153_v2, %v151_v59 }
 0x1ff   :  { %v207_v9 = vmax.f32 %v154_v5, 1e-16 }
 0x201   :  { %v158_v61 = vpop.xlane.xlu0 %157  ;;  %v197_v12 = vpop.xlane.xlu1 %196 }
 0x205   :  { %v165_v62 = vpop.xlane.xlu0 %164 }
 0x206   :  { %v178_v0 = vsel %vm97_vm1, %v158_v61, %v165_v62 }
 0x207   :  { %v179_v3 = vsel %vm99_vm2, %v178_v0, %v171_v63 }
 0x209   :  { %v177_v4 = vpop.xlane.xlu0 %176 }
 0x20a   :  { %v180_v7 = vsel %vm101_vm3, %v179_v3, %v177_v4 }
 0x20b   :  { %v209_v8 = vmax.f32 %v180_v7, 1e-16 }
 0x20d   :  { %v191_v10 = vpop.xlane.xlu0 %190  ;;  %270 = vrsqrt.f32 %v209_v8 }
 0x20e   :  { %v204_v11 = vsel %vm97_vm1, %v184_v6, %v191_v10  ;;  %272 = vrsqrt.f32 %v207_v9 }
 0x20f   :  { %v205_v13 = vsel %vm99_vm2, %v204_v11, %v197_v12 }
 0x211   :  { %v203_v14 = vpop.xlane.xlu0 %202 }
 0x212   :  { %v206_v15 = vsel %vm101_vm3, %v205_v13, %v203_v14 }
 0x213   :  { %v211_v16 = vmax.f32 %v206_v15, 1e-16 }
 0x215   :  { %274 = vrsqrt.f32 %v211_v16 }
 0x217   :  { %v271_v17 = vpop.eup %270 }
 0x218   :  { %v273_v18 = vpop.eup %272 }
 0x219   :  { %v213_v19 = vmul.f32 %v273_v18, %v271_v17 }
 0x21b   :  { %v214_v21 = vmul.f32 %v213_v19, %v395_v31 }
 0x21d   :  { %v215_v24 = vsub.f32 1.0, %v214_v21 }
 0x21f   :  { %v275_v20 = vpop.eup %274 }
 0x220   :  { %v216_v22 = vmul.f32 %v275_v20, %v273_v18 }
 0x222   :  { %v217_v23 = vmul.f32 %v216_v22, %v400_v37 }
 0x224   :  { %v218_v25 = vsub.f32 1.0, %v217_v23 }
 0x226   :  { %v219_v26 = vsub.f32 %v215_v24, %v218_v25 }
 0x228   :  { %v220_v27 = vadd.f32 0.2, %v219_v26 }
 0x22a   :  { %v221_v28 = vmax.f32 %v220_v27, 0.0 }
 0x22c   :  { %v223_v29 = vsel %vm222_vm4, %v221_v28, 0.0 }
 0x22d   :  { %224 = vadd.xlane.f32.xlu1 %v223_v29 }
 0x2ba   :  { %v225_v32 = vpop.xlane.xlu1 %224 }
 0x2bb   :  { %v227_v33 = vsel %vm226_vm5, %v225_v32, 0.0 }
 0x2bc   :  { %v228_v34 = vrot.slane %v227_v33, 4 }
 0x2be   :  { %v229_v35 = vadd.f32 %v228_v34, %v227_v33 }
 0x2c0   :  { %v230_v36 = vrot.slane %v229_v35, 2 }
 0x2c2   :  { %v231_v31 = vadd.f32 %v230_v36, %v229_v35 }
 0x2c4   :  { %v232_v38 = vrot.slane %v231_v31, 1 }
 0x2c6   :  { %v233_v37 = vadd.f32 %v232_v38, %v231_v31 }
 0x2c8   :  { %v235_v40 = vadd.f32 %v234_v39, %v233_v37 }
 0x2ca   :  { %236 = vst [vmem:[#allocation5] sm:$0x1] %v235_v40 }
 0x2cb   :  { %309 = shalt.err (!%p306_p12)
}
 0x2cc   :  { %s310_s7 = scalar_lea.hbm %s439_s3, 16 }
 0x2cd   :  { %p311_p13 = scmp.ne.s32.totalorder %s439_s3, %s310_s7  ;;  %p314_p0 = scmp.lt.u32.totalorder %s310_s7, %s439_s3 }
 0x2cf   :  { %p316_p1 = pnand %p314_p0, %p311_p13 }
 0x2d1   :  { %319 = shalt.err (!%p316_p1)
}
 0x2d2   :  { %246 = dma.vmem_to_hbm [thread:$0]  %s244_s2, 16, %s439_s3, [#allocation4]  }
 0x2d3   :  { %322 = dma.done.wait [#allocation4], 16  }
 0x2d4   :  { %323 = vsyncadd [#allocation4], 4294967280 }
 0x2d5   :  { %250 = vsyncpa [#allocation3], 1 }
 0x2d6   :  { %251 = vsyncpa [#allocation4], 1 }

</bundles_post_ra>
